<compile_context>
chip_gen: v6e
topology: v6e:2x2x1
jax: 0.10.0
libtpu: 0.0.40
codegen_flags: <defaults>
</compile_context>

<pallas_src>
import jax
import jax.numpy as jnp
from jax.experimental import pallas as pl
from jax.experimental.pallas import tpu as pltpu

HIDDEN_SIZE = 32
VISIBLE_SIZE = 4
FULL = VISIBLE_SIZE + HIDDEN_SIZE      # 36
RECURRENCE = 0.5                       # params['lambda']
USE_BIAS = True                        # params['bias']
T_STEPS = 8                            # sequence length X.shape[0]

V_PAD = 8       # sublane-aligned padding of the visible/node axis
K_PAD = 40      # contraction (full_size) dim padded to a multiple of 8
F_PAD = 128     # lane-aligned padding of the output full_size axis
# TODO(synk): only af='tanh' (flag=False branch) is implemented; the
# relu / relu_1n / sigmoid / linear activation choices are not exercised.


def in_rnn_kernel(x_ref, wt_ref, lam_ref, c0_ref, oml_ref, u_ref):
    """Runs the entire T_STEPS recurrence in one kernel invocation.

    x_ref:   (T_STEPS, F_PAD)  padded X, time-major (first VISIBLE lanes nonzero)
    wt_ref:  (K_PAD, F_PAD)    W.weight^T, zero padded
    lam_ref: (V_PAD, F_PAD)    Lambda, zero padded
    c0_ref:  (V_PAD, F_PAD)    Lambda * bias, zero padded (precomputed at init)
    oml_ref: (V_PAD, F_PAD)    1 - Lambda, zero padded (precomputed at init)
    u_ref:   (V_PAD, F_PAD)    output: final U tile (diag taken in the wrapper)

    Zero padding is semantics-preserving: since lam/c0/oml are zero in all
    padded rows/lanes and x is zero in padded lanes, U and R stay exactly 0
    outside rows 0..VISIBLE-1 / lanes 0..FULL-1, and W^T rows FULL..K_PAD-1
    are zero so the padded contraction lanes contribute nothing.
    """
    # Loop-invariant operands, hoisted out of the recurrence.
    wt = wt_ref[...]        # (K_PAD, F_PAD) -> 5 vregs, single MXU weight push
    lam = lam_ref[...]
    c0 = c0_ref[...]
    oml = oml_ref[...]

    # Per-step affine constants c_t = Lambda*b + (1-Lambda)*Y_t.  Independent
    # of the recurrent state, so this work overlaps with the matmuls and stays
    # off the serial critical path.
    cs = []
    for t in range(T_STEPS):
        y = jnp.broadcast_to(x_ref[pl.ds(t, 1), :], (V_PAD, F_PAD))
        cs.append(c0 + oml * y)

    # Step 0: R == 0, so U = Lambda*b + (1-Lambda)*Y_0 exactly; skip the matmul.
    u = cs[0]
    r = jnp.tanh(u[:, :K_PAD])            # phi = tanh; only K lanes feed the MXU

    # Remaining steps, fully unrolled: R/U stay in vregs across all steps.
    for t in range(1, T_STEPS):
        d = jnp.dot(r, wt, preferred_element_type=jnp.float32)   # (V_PAD, F_PAD)
        u = lam * d + cs[t]               # == Lambda*(R@W^T + b) + (1-Lambda)*Y
        r = jnp.tanh(u[:, :K_PAD])
    u_ref[...] = u                        # single unmasked lane-dense store


def prepare_params(w_weight, w_bias, lam):
    """Pad / pre-transform the time-invariant parameters ONCE at init.

    Keeps the per-call forward down to one small x pad + the kernel call.
    """
    wt_p = jnp.zeros((K_PAD, F_PAD), jnp.float32).at[:FULL, :FULL].set(w_weight.T)
    lam_p = jnp.zeros((V_PAD, F_PAD), jnp.float32).at[:VISIBLE_SIZE, :FULL].set(lam)
    c0_p = jnp.zeros((V_PAD, F_PAD), jnp.float32).at[:VISIBLE_SIZE, :FULL].set(
        lam * w_bias[None, :])
    oml_p = jnp.zeros((V_PAD, F_PAD), jnp.float32).at[:VISIBLE_SIZE, :FULL].set(
        1.0 - lam)
    return wt_p, lam_p, c0_p, oml_p


@jax.jit
def in_rnn_forward(x, wt_p, lam_p, c0_p, oml_p):
    """x: (T_STEPS, VISIBLE_SIZE) f32 -> diag(U[:, :VISIBLE_SIZE]), shape (VISIBLE_SIZE,)."""
    # Only the activations are padded per call; parameters arrive pre-padded.
    x_p = jnp.zeros((T_STEPS, F_PAD), jnp.float32).at[:, :VISIBLE_SIZE].set(x)

    u_full = pl.pallas_call(
        in_rnn_kernel,
        out_shape=jax.ShapeDtypeStruct((V_PAD, F_PAD), jnp.float32),
        # No grid: whole operands resident in VMEM (~30 KiB total), no per-step
        # pipeline state.  Batched/multi-sequence use would add a "parallel"
        # grid axis here (2 TCs on v7x); a single sequence is one serial chain.
        in_specs=[pl.BlockSpec(memory_space=pltpu.MemorySpace.VMEM)
                  for _ in range(5)],
        out_specs=pl.BlockSpec(memory_space=pltpu.MemorySpace.VMEM),
    )(x_p, wt_p, lam_p, c0_p, oml_p)

    # diag(U[:, :VISIBLE]) extracted in plain JAX (keeps kernel epilogue to a
    # single store; avoids in-kernel cross-sublane XLU work).
    return jnp.diagonal(u_full[:VISIBLE_SIZE, :VISIBLE_SIZE])


# --------------------------- pure-JAX reference ------------------------------
def in_rnn_reference(x, w_weight, w_bias, lam):
    V, F = lam.shape
    R = jnp.zeros((V, F), jnp.float32)
    U = jnp.zeros((V, F), jnp.float32)
    for t in range(x.shape[0]):
        Y = jnp.zeros((V, F), jnp.float32).at[:, :V].set(
            jnp.broadcast_to(x[t], (V, V)))
        U = lam * (R @ w_weight.T + w_bias) + (1.0 - lam) * Y
        R = jnp.tanh(U)
    return jnp.diag(U[:, :V])


# --------------------------------- main ---------------------------------------
if __name__ == "__main__":
    key = jax.random.PRNGKey(0)
    k_x, k_w, k_b = jax.random.split(key, 3)

    # Deterministic synthetic parameters (nn.Linear-like uniform init scale).
    bound = 1.0 / jnp.sqrt(jnp.float32(FULL))
    w_weight = jax.random.uniform(k_w, (FULL, FULL), jnp.float32, -bound, bound)
    w_bias = (jax.random.uniform(k_b, (FULL,), jnp.float32, -bound, bound)
              if USE_BIAS else jnp.zeros((FULL,), jnp.float32))

    # Lambda = [ones(V,V)*recurrence | ones(V,H)], diagonal of visible block = 1.
    lam = jnp.concatenate(
        [jnp.full((VISIBLE_SIZE, VISIBLE_SIZE), RECURRENCE, jnp.float32),
         jnp.ones((VISIBLE_SIZE, HIDDEN_SIZE), jnp.float32)], axis=1)
    lam = lam.at[jnp.arange(VISIBLE_SIZE), jnp.arange(VISIBLE_SIZE)].set(1.0)

    x = jax.random.normal(k_x, (T_STEPS, VISIBLE_SIZE), jnp.float32)

    # Parameters padded once (model "init"); reused across every forward call.
    padded_params = prepare_params(w_weight, w_bias, lam)

    out = in_rnn_forward(x, *padded_params)
    out = jax.block_until_ready(out)

    ref = in_rnn_reference(x, w_weight, w_bias, lam)
    assert out.shape == (VISIBLE_SIZE,)
    assert jnp.allclose(out, ref, atol=1e-5, rtol=1e-5), (out, ref)

    print("KERNEL_OK")
</pallas_src>

<mosaic_0001>
module attributes {stable_mosaic.version = 11 : i64} {
  func.func @in_rnn_kernel(%arg0: memref<8x128xf32, #tpu.memory_space<vmem>>, %arg1: memref<40x128xf32, #tpu.memory_space<vmem>>, %arg2: memref<8x128xf32, #tpu.memory_space<vmem>>, %arg3: memref<8x128xf32, #tpu.memory_space<vmem>>, %arg4: memref<8x128xf32, #tpu.memory_space<vmem>>, %arg5: memref<8x128xf32, #tpu.memory_space<vmem>>) attributes {dimension_semantics = [], scalar_prefetch = 0 : i64, scratch_operands = 0 : i64, tpu.core_type = #tpu.core_type<tc>} {
    %c0 = arith.constant 0 : index
    %c0_0 = arith.constant 0 : index
    %0 = vector.load %arg1[%c0, %c0_0] : memref<40x128xf32, #tpu.memory_space<vmem>>, vector<40x128xf32>
    %c0_1 = arith.constant 0 : index
    %c0_2 = arith.constant 0 : index
    %1 = vector.load %arg2[%c0_1, %c0_2] : memref<8x128xf32, #tpu.memory_space<vmem>>, vector<8x128xf32>
    %c0_3 = arith.constant 0 : index
    %c0_4 = arith.constant 0 : index
    %2 = vector.load %arg3[%c0_3, %c0_4] : memref<8x128xf32, #tpu.memory_space<vmem>>, vector<8x128xf32>
    %c0_5 = arith.constant 0 : index
    %c0_6 = arith.constant 0 : index
    %3 = vector.load %arg4[%c0_5, %c0_6] : memref<8x128xf32, #tpu.memory_space<vmem>>, vector<8x128xf32>
    %c0_7 = arith.constant 0 : index
    %c0_8 = arith.constant 0 : index
    %4 = vector.load %arg0[%c0_7, %c0_8] : memref<8x128xf32, #tpu.memory_space<vmem>>, vector<1x128xf32>
    %5 = vector.shape_cast %4 : vector<1x128xf32> to vector<1x128xf32>
    %6 = vector.broadcast %5 : vector<1x128xf32> to vector<8x128xf32>
    %7 = arith.mulf %3, %6 : vector<8x128xf32>
    %8 = arith.addf %2, %7 : vector<8x128xf32>
    %c1 = arith.constant 1 : index
    %c0_9 = arith.constant 0 : index
    %9 = vector.load %arg0[%c1, %c0_9] : memref<8x128xf32, #tpu.memory_space<vmem>>, vector<1x128xf32>
    %10 = vector.shape_cast %9 : vector<1x128xf32> to vector<1x128xf32>
    %11 = vector.broadcast %10 : vector<1x128xf32> to vector<8x128xf32>
    %12 = arith.mulf %3, %11 : vector<8x128xf32>
    %13 = arith.addf %2, %12 : vector<8x128xf32>
    %c2 = arith.constant 2 : index
    %c0_10 = arith.constant 0 : index
    %14 = vector.load %arg0[%c2, %c0_10] : memref<8x128xf32, #tpu.memory_space<vmem>>, vector<1x128xf32>
    %15 = vector.shape_cast %14 : vector<1x128xf32> to vector<1x128xf32>
    %16 = vector.broadcast %15 : vector<1x128xf32> to vector<8x128xf32>
    %17 = arith.mulf %3, %16 : vector<8x128xf32>
    %18 = arith.addf %2, %17 : vector<8x128xf32>
    %c3 = arith.constant 3 : index
    %c0_11 = arith.constant 0 : index
    %19 = vector.load %arg0[%c3, %c0_11] : memref<8x128xf32, #tpu.memory_space<vmem>>, vector<1x128xf32>
    %20 = vector.shape_cast %19 : vector<1x128xf32> to vector<1x128xf32>
    %21 = vector.broadcast %20 : vector<1x128xf32> to vector<8x128xf32>
    %22 = arith.mulf %3, %21 : vector<8x128xf32>
    %23 = arith.addf %2, %22 : vector<8x128xf32>
    %c4 = arith.constant 4 : index
    %c0_12 = arith.constant 0 : index
    %24 = vector.load %arg0[%c4, %c0_12] : memref<8x128xf32, #tpu.memory_space<vmem>>, vector<1x128xf32>
    %25 = vector.shape_cast %24 : vector<1x128xf32> to vector<1x128xf32>
    %26 = vector.broadcast %25 : vector<1x128xf32> to vector<8x128xf32>
    %27 = arith.mulf %3, %26 : vector<8x128xf32>
    %28 = arith.addf %2, %27 : vector<8x128xf32>
    %c5 = arith.constant 5 : index
    %c0_13 = arith.constant 0 : index
    %29 = vector.load %arg0[%c5, %c0_13] : memref<8x128xf32, #tpu.memory_space<vmem>>, vector<1x128xf32>
    %30 = vector.shape_cast %29 : vector<1x128xf32> to vector<1x128xf32>
    %31 = vector.broadcast %30 : vector<1x128xf32> to vector<8x128xf32>
    %32 = arith.mulf %3, %31 : vector<8x128xf32>
    %33 = arith.addf %2, %32 : vector<8x128xf32>
    %c6 = arith.constant 6 : index
    %c0_14 = arith.constant 0 : index
    %34 = vector.load %arg0[%c6, %c0_14] : memref<8x128xf32, #tpu.memory_space<vmem>>, vector<1x128xf32>
    %35 = vector.shape_cast %34 : vector<1x128xf32> to vector<1x128xf32>
    %36 = vector.broadcast %35 : vector<1x128xf32> to vector<8x128xf32>
    %37 = arith.mulf %3, %36 : vector<8x128xf32>
    %38 = arith.addf %2, %37 : vector<8x128xf32>
    %c7 = arith.constant 7 : index
    %c0_15 = arith.constant 0 : index
    %39 = vector.load %arg0[%c7, %c0_15] : memref<8x128xf32, #tpu.memory_space<vmem>>, vector<1x128xf32>
    %40 = vector.shape_cast %39 : vector<1x128xf32> to vector<1x128xf32>
    %41 = vector.broadcast %40 : vector<1x128xf32> to vector<8x128xf32>
    %42 = arith.mulf %3, %41 : vector<8x128xf32>
    %43 = arith.addf %2, %42 : vector<8x128xf32>
    %44 = vector.extract_strided_slice %8 {offsets = [0, 0], sizes = [8, 40], strides = [1, 1]} : vector<8x128xf32> to vector<8x40xf32>
    %45 = math.tanh %44 : vector<8x40xf32>
    %cst = arith.constant dense<0.000000e+00> : vector<8x128xf32>
    %46 = tpu.matmul %45, %0, %cst {dimension_numbers = #tpu.dot_dimension_numbers<[1], [0], [0], [1], [0, 0, 1, 1], [], []>} : vector<8x40xf32>, vector<40x128xf32>, vector<8x128xf32> -> vector<8x128xf32>
    %47 = arith.mulf %1, %46 : vector<8x128xf32>
    %48 = arith.addf %47, %13 : vector<8x128xf32>
    %49 = vector.extract_strided_slice %48 {offsets = [0, 0], sizes = [8, 40], strides = [1, 1]} : vector<8x128xf32> to vector<8x40xf32>
    %50 = math.tanh %49 : vector<8x40xf32>
    %cst_16 = arith.constant dense<0.000000e+00> : vector<8x128xf32>
    %51 = tpu.matmul %50, %0, %cst_16 {dimension_numbers = #tpu.dot_dimension_numbers<[1], [0], [0], [1], [0, 0, 1, 1], [], []>} : vector<8x40xf32>, vector<40x128xf32>, vector<8x128xf32> -> vector<8x128xf32>
    %52 = arith.mulf %1, %51 : vector<8x128xf32>
    %53 = arith.addf %52, %18 : vector<8x128xf32>
    %54 = vector.extract_strided_slice %53 {offsets = [0, 0], sizes = [8, 40], strides = [1, 1]} : vector<8x128xf32> to vector<8x40xf32>
    %55 = math.tanh %54 : vector<8x40xf32>
    %cst_17 = arith.constant dense<0.000000e+00> : vector<8x128xf32>
    %56 = tpu.matmul %55, %0, %cst_17 {dimension_numbers = #tpu.dot_dimension_numbers<[1], [0], [0], [1], [0, 0, 1, 1], [], []>} : vector<8x40xf32>, vector<40x128xf32>, vector<8x128xf32> -> vector<8x128xf32>
    %57 = arith.mulf %1, %56 : vector<8x128xf32>
    %58 = arith.addf %57, %23 : vector<8x128xf32>
    %59 = vector.extract_strided_slice %58 {offsets = [0, 0], sizes = [8, 40], strides = [1, 1]} : vector<8x128xf32> to vector<8x40xf32>
    %60 = math.tanh %59 : vector<8x40xf32>
    %cst_18 = arith.constant dense<0.000000e+00> : vector<8x128xf32>
    %61 = tpu.matmul %60, %0, %cst_18 {dimension_numbers = #tpu.dot_dimension_numbers<[1], [0], [0], [1], [0, 0, 1, 1], [], []>} : vector<8x40xf32>, vector<40x128xf32>, vector<8x128xf32> -> vector<8x128xf32>
    %62 = arith.mulf %1, %61 : vector<8x128xf32>
    %63 = arith.addf %62, %28 : vector<8x128xf32>
    %64 = vector.extract_strided_slice %63 {offsets = [0, 0], sizes = [8, 40], strides = [1, 1]} : vector<8x128xf32> to vector<8x40xf32>
    %65 = math.tanh %64 : vector<8x40xf32>
    %cst_19 = arith.constant dense<0.000000e+00> : vector<8x128xf32>
    %66 = tpu.matmul %65, %0, %cst_19 {dimension_numbers = #tpu.dot_dimension_numbers<[1], [0], [0], [1], [0, 0, 1, 1], [], []>} : vector<8x40xf32>, vector<40x128xf32>, vector<8x128xf32> -> vector<8x128xf32>
    %67 = arith.mulf %1, %66 : vector<8x128xf32>
    %68 = arith.addf %67, %33 : vector<8x128xf32>
    %69 = vector.extract_strided_slice %68 {offsets = [0, 0], sizes = [8, 40], strides = [1, 1]} : vector<8x128xf32> to vector<8x40xf32>
    %70 = math.tanh %69 : vector<8x40xf32>
    %cst_20 = arith.constant dense<0.000000e+00> : vector<8x128xf32>
    %71 = tpu.matmul %70, %0, %cst_20 {dimension_numbers = #tpu.dot_dimension_numbers<[1], [0], [0], [1], [0, 0, 1, 1], [], []>} : vector<8x40xf32>, vector<40x128xf32>, vector<8x128xf32> -> vector<8x128xf32>
    %72 = arith.mulf %1, %71 : vector<8x128xf32>
    %73 = arith.addf %72, %38 : vector<8x128xf32>
    %74 = vector.extract_strided_slice %73 {offsets = [0, 0], sizes = [8, 40], strides = [1, 1]} : vector<8x128xf32> to vector<8x40xf32>
    %75 = math.tanh %74 : vector<8x40xf32>
    %cst_21 = arith.constant dense<0.000000e+00> : vector<8x128xf32>
    %76 = tpu.matmul %75, %0, %cst_21 {dimension_numbers = #tpu.dot_dimension_numbers<[1], [0], [0], [1], [0, 0, 1, 1], [], []>} : vector<8x40xf32>, vector<40x128xf32>, vector<8x128xf32> -> vector<8x128xf32>
    %77 = arith.mulf %1, %76 : vector<8x128xf32>
    %78 = arith.addf %77, %43 : vector<8x128xf32>
    %c0_22 = arith.constant 0 : index
    %c0_23 = arith.constant 0 : index
    %79 = vector.load %arg5[%c0_22, %c0_23] : memref<8x128xf32, #tpu.memory_space<vmem>>, vector<8x128xf32>
    tpu.vector_store %arg5[%c0_22, %c0_23], %78 {strides = array<i32>} : memref<8x128xf32, #tpu.memory_space<vmem>>, vector<8x128xf32>,
    return
  }
}

</mosaic_0001>

<bundles_post_ra>
// kernel: in_rnn_forward.1
= control target key start
LH: loop header
LB: loop body
LE: loop exit
PB: predicated region body
PF: predicated region fallthrough
CT: control target
= control target key end

     0   :  { %10 = vsyncpa [#allocation3], 0  ;;  %s1073_s0 = inlined_call_operand.vmem [shape: f32[8,128], index: 0, kind: input, shape index: {}]   ;;  %s1074_s1 = inlined_call_operand.vmem [shape: f32[40,128], index: 1, kind: input, shape index: {}]   ;;  %s1075_s2 = inlined_call_operand.vmem [shape: f32[8,128], index: 2, kind: input, shape index: {}]   ;;  %s1076_s3 = inlined_call_operand.hbm [shape: f32[8,128], index: 3, kind: input, shape index: {}]   ;;  %s1077_s4 = inlined_call_operand.hbm [shape: f32[8,128], index: 4, kind: input, shape index: {}]   ;;  %s1078_s5 = inlined_call_operand.vmem [shape: f32[8,128], index: 5, kind: output, shape index: {}]  }
   0x1   :  { %11 = vsyncpa [#allocation5], 0  ;;  %s858_s18 = smov [#allocation2]   ;;  %s859_s20 = smov [#allocation4]  }
   0x2   :  { %s24_s19 = sshll.u32 %s858_s18, 4  ;;  %s34_s21 = sshll.u32 %s859_s20, 4  ;;  %s25_s19 = int_to_ptr.vmem [resolvable:$true] %s24_s19  ;;  %s35_s21 = int_to_ptr.vmem [resolvable:$true] %s34_s21 }
   0x3   :  { %s822_s22 = scalar_lea.vmem %s25_s19, 128  ;;  %p827_p1 = scmp.lt.s32.totalorder %s25_s19, %s25_s19 }
   0x4   :  { %p823_p0 = scmp.ne.s32.totalorder %s25_s19, %s822_s22  ;;  %p828_p2 = scmp.lt.s32.totalorder %s822_s22, %s822_s22 }
   0x6   :  { %p829_p3 = por %p828_p2, %p827_p1 }
   0x8   :  { %p830_p4 = pnand %p829_p3, %p823_p0 }
   0xa   :  { %833 = shalt.err (!%p830_p4)
}
   0xb   :  { %27 = dma.hbm_to_vmem [thread:$0]  %s1076_s3, 128, %s25_s19, [#allocation3]  }
   0xc   :  { %s842_s25 = scalar_lea.vmem %s35_s21, 128  ;;  %p847_p6 = scmp.lt.s32.totalorder %s35_s21, %s35_s21 }
   0xd   :  { %p843_p5 = scmp.ne.s32.totalorder %s35_s21, %s842_s25  ;;  %p848_p7 = scmp.lt.s32.totalorder %s842_s25, %s842_s25 }
   0xf   :  { %p849_p8 = por %p848_p7, %p847_p6 }
  0x11   :  { %p850_p9 = pnand %p849_p8, %p843_p5 }
  0x13   :  { %853 = shalt.err (!%p850_p9)
}
  0x14   :  { %37 = dma.hbm_to_vmem [thread:$0]  %s1077_s4, 128, %s35_s21, [#allocation5]  }
  0x15   :  { %854 = dma.done.wait [#allocation3], 128  }
  0x16   :  { %855 = vsyncadd [#allocation3], 4294967168 }
  0x17   :  { %856 = dma.done.wait [#allocation5], 128  }
  0x18   :  { %857 = vsyncadd [#allocation5], 4294967168  ;;  %v860_v0 = vmov 0.0   ;;  %vm861_vm0 = vmmov 0   ;;  %v907_v1 = vld [vmem:[%s1074_s1 + $0x20] sm:$0xff]  ;;  %v912_v2 = vld [vmem:[%s1074_s1 + $0x18] sm:$0xff] }
  0x19   :  { %705 = vmatprep.subr.mxu0 %v860_v0  ;;  %715 = vmatprep.mubr.msk.f32.mxu0 %vm861_vm0, %v860_v0  ;;  %v918_v3 = vld [vmem:[%s1074_s1 + $0x10] sm:$0xff]  ;;  %v922_v4 = vld [vmem:[#allocation2] sm:$0xff]  ;;  %v924_v5 = vld [vmem:[#allocation4] sm:$0xff]  ;;  %vm109_vm1 = vcmask 326656  }
  0x1a   :  { %718 = vmatprep.subr.mxu1 %v860_v0  ;;  %728 = vmatprep.mubr.msk.f32.mxu1 %vm861_vm0, %v860_v0  ;;  %v648_v6 = vld [vmem:[%s1073_s0] ss:$0 sm:$0xff]  ;;  %v937_v8 = vld [vmem:[%s1074_s1 + $0x8] sm:$0xff]  ;;  %v649_v12 = vld [vmem:[%s1073_s0 + $0x1] ss:$0 sm:$0xff] }
  0x1b   :  { %706 = vmatpush3.msra.mxu0 %v907_v1  ;;  %719 = vmatpush3.msra.mxu1 %v907_v1  ;;  %v57_v7 = vmul.f32 %v648_v6, %v924_v5  ;;  %v947_v10 = vld [vmem:[%s1074_s1] sm:$0xff]  ;;  %v64_v13 = vmul.f32 %v649_v12, %v924_v5 }
  0x1c   :  { %707 = vmatprep.subr.mxu0 %v860_v0  ;;  %720 = vmatprep.subr.mxu1 %v860_v0  ;;  %v978_v14 = vld [vmem:[%s1075_s2] sm:$0xff] }
  0x1d   :  { %708 = vmatpush3.msra.mxu0 %v912_v2  ;;  %721 = vmatpush3.msra.mxu1 %v912_v2  ;;  %v58_v9 = vadd.f32 %v57_v7, %v922_v4  ;;  %v65_v15 = vadd.f32 %v64_v13, %v922_v4  ;;  %v650_v21 = vld [vmem:[%s1073_s0 + $0x2] ss:$0 sm:$0xff]  ;;  %v651_v29 = vld [vmem:[%s1073_s0 + $0x3] ss:$0 sm:$0xff]  ;;  %v652_v37 = vld [vmem:[%s1073_s0 + $0x4] ss:$0 sm:$0xff] }
  0x1e   :  { %709 = vmatprep.subr.mxu0 %v860_v0  ;;  %722 = vmatprep.subr.mxu1 %v860_v0  ;;  %v71_v22 = vmul.f32 %v650_v21, %v924_v5  ;;  %v78_v30 = vmul.f32 %v651_v29, %v924_v5  ;;  %v85_v38 = vmul.f32 %v652_v37, %v924_v5  ;;  %v653_v45 = vld [vmem:[%s1073_s0 + $0x5] ss:$0 sm:$0xff]  ;;  %v654_v53 = vld [vmem:[%s1073_s0 + $0x6] ss:$0 sm:$0xff]  ;;  %v655_v61 = vld [vmem:[%s1073_s0 + $0x7] ss:$0 sm:$0xff] }
  0x1f   :  { %710 = vmatpush3.msra.mxu0 %v918_v3  ;;  %723 = vmatpush3.msra.mxu1 %v918_v3  ;;  %800 = vtanh.f32 %v58_v9  ;;  %v92_v46 = vmul.f32 %v653_v45, %v924_v5  ;;  %v99_v54 = vmul.f32 %v654_v53, %v924_v5  ;;  %v106_v62 = vmul.f32 %v655_v61, %v924_v5 }
  0x20   :  { %711 = vmatprep.subr.mxu0 %v860_v0  ;;  %724 = vmatprep.subr.mxu1 %v860_v0  ;;  %v72_v23 = vadd.f32 %v71_v22, %v922_v4  ;;  %v79_v31 = vadd.f32 %v78_v30, %v922_v4  ;;  %v86_v39 = vadd.f32 %v85_v38, %v922_v4 }
  0x21   :  { %712 = vmatpush3.msra.mxu0 %v937_v8  ;;  %725 = vmatpush3.msra.mxu1 %v937_v8  ;;  %v93_v47 = vadd.f32 %v92_v46, %v922_v4  ;;  %v100_v55 = vadd.f32 %v99_v54, %v922_v4  ;;  %v107_v63 = vadd.f32 %v106_v62, %v922_v4 }
  0x22   :  { %713 = vmatprep.subr.mxu0 %v860_v0  ;;  %726 = vmatprep.subr.mxu1 %v860_v0 }
  0x23   :  { %714 = vmatpush3.msra.mxu0 %v947_v10  ;;  %727 = vmatpush3.msra.mxu1 %v947_v10 }
  0x24   :  { %731 = vmatprep.subr.mxu0 %v860_v0  ;;  %744 = vmatprep.subr.mxu1 %v860_v0 }
  0x2c   :  { %v801_v11 = vpop.eup %800 }
  0x2d   :  { %716 = vmatmul.mubr.msk.f32.vlgmr.msra.gmra.mxu0 %vm109_vm1, %v801_v11 }
  0x2e   :  { %732 = vmatpush3.msra.mxu0 %v907_v1  ;;  %741 = vmatprep.mubr.msk.f32.mxu0 %vm861_vm0, %v860_v0 }
  0x2f   :  { %733 = vmatprep.subr.mxu0 %v860_v0 }
  0x30   :  { %734 = vmatpush3.msra.mxu0 %v912_v2 }
  0x31   :  { %735 = vmatprep.subr.mxu0 %v860_v0 }
  0x32   :  { %736 = vmatpush3.msra.mxu0 %v918_v3 }
  0x33   :  { %737 = vmatprep.subr.mxu0 %v860_v0 }
  0x34   :  { %738 = vmatpush3.msra.mxu0 %v937_v8 }
  0x35   :  { %739 = vmatprep.subr.mxu0 %v860_v0 }
  0x36   :  { %740 = vmatpush3.msra.mxu0 %v947_v10 }
  0x37   :  { %757 = vmatprep.subr.mxu0 %v860_v0 }
  0xed   :  { %v179_v16 = vpop.f32.mrf.mxu0 }
  0xee   :  { %v183_v17 = vmul.f32 %v179_v16, %v978_v14 }
  0xef   :  { %v717_v18 = vpop.f32.mrf.mxu0 }
  0xf0   :  { %v184_v19 = vadd.f32 %v183_v17, %v65_v15 }
  0xf2   :  { %802 = vtanh.f32 %v184_v19 }
  0xff   :  { %v803_v20 = vpop.eup %802 }
 0x100   :  { %729 = vmatmul.mubr.msk.f32.vlgmr.msra.gmra.mxu1 %vm109_vm1, %v803_v20 }
 0x101   :  { %745 = vmatpush3.msra.mxu1 %v907_v1  ;;  %754 = vmatprep.mubr.msk.f32.mxu1 %vm861_vm0, %v860_v0 }
 0x102   :  { %746 = vmatprep.subr.mxu1 %v860_v0 }
 0x103   :  { %747 = vmatpush3.msra.mxu1 %v912_v2 }
 0x104   :  { %748 = vmatprep.subr.mxu1 %v860_v0 }
 0x105   :  { %749 = vmatpush3.msra.mxu1 %v918_v3 }
 0x106   :  { %750 = vmatprep.subr.mxu1 %v860_v0 }
 0x107   :  { %751 = vmatpush3.msra.mxu1 %v937_v8 }
 0x108   :  { %752 = vmatprep.subr.mxu1 %v860_v0 }
 0x109   :  { %753 = vmatpush3.msra.mxu1 %v947_v10 }
 0x10a   :  { %770 = vmatprep.subr.mxu1 %v860_v0 }
 0x1c0   :  { %v255_v24 = vpop.f32.mrf.mxu1 }
 0x1c1   :  { %v259_v25 = vmul.f32 %v255_v24, %v978_v14 }
 0x1c2   :  { %v730_v26 = vpop.f32.mrf.mxu1 }
 0x1c3   :  { %v260_v27 = vadd.f32 %v259_v25, %v72_v23 }
 0x1c5   :  { %804 = vtanh.f32 %v260_v27 }
 0x1d2   :  { %v805_v28 = vpop.eup %804 }
 0x1d3   :  { %742 = vmatmul.mubr.msk.f32.vlgmr.msra.gmra.mxu0 %vm109_vm1, %v805_v28 }
 0x1d4   :  { %758 = vmatpush3.msra.mxu0 %v907_v1  ;;  %767 = vmatprep.mubr.msk.f32.mxu0 %vm861_vm0, %v860_v0 }
 0x1d5   :  { %759 = vmatprep.subr.mxu0 %v860_v0 }
 0x1d6   :  { %760 = vmatpush3.msra.mxu0 %v912_v2 }
 0x1d7   :  { %761 = vmatprep.subr.mxu0 %v860_v0 }
 0x1d8   :  { %762 = vmatpush3.msra.mxu0 %v918_v3 }
 0x1d9   :  { %763 = vmatprep.subr.mxu0 %v860_v0 }
 0x1da   :  { %764 = vmatpush3.msra.mxu0 %v937_v8 }
 0x1db   :  { %765 = vmatprep.subr.mxu0 %v860_v0 }
 0x1dc   :  { %766 = vmatpush3.msra.mxu0 %v947_v10 }
 0x1dd   :  { %783 = vmatprep.subr.mxu0 %v860_v0 }
 0x293   :  { %v331_v32 = vpop.f32.mrf.mxu0 }
 0x294   :  { %v335_v33 = vmul.f32 %v331_v32, %v978_v14 }
 0x295   :  { %v743_v34 = vpop.f32.mrf.mxu0 }
 0x296   :  { %v336_v35 = vadd.f32 %v335_v33, %v79_v31 }
 0x298   :  { %806 = vtanh.f32 %v336_v35 }
 0x2a5   :  { %v807_v36 = vpop.eup %806 }
 0x2a6   :  { %755 = vmatmul.mubr.msk.f32.vlgmr.msra.gmra.mxu1 %vm109_vm1, %v807_v36 }
 0x2a7   :  { %771 = vmatpush3.msra.mxu1 %v907_v1  ;;  %780 = vmatprep.mubr.msk.f32.mxu1 %vm861_vm0, %v860_v0 }
 0x2a8   :  { %772 = vmatprep.subr.mxu1 %v860_v0 }
 0x2a9   :  { %773 = vmatpush3.msra.mxu1 %v912_v2 }
 0x2aa   :  { %774 = vmatprep.subr.mxu1 %v860_v0 }
 0x2ab   :  { %775 = vmatpush3.msra.mxu1 %v918_v3 }
 0x2ac   :  { %776 = vmatprep.subr.mxu1 %v860_v0 }
 0x2ad   :  { %777 = vmatpush3.msra.mxu1 %v937_v8 }
 0x2ae   :  { %778 = vmatprep.subr.mxu1 %v860_v0 }
 0x2af   :  { %779 = vmatpush3.msra.mxu1 %v947_v10 }
 0x366   :  { %v407_v40 = vpop.f32.mrf.mxu1 }
 0x367   :  { %v411_v41 = vmul.f32 %v407_v40, %v978_v14 }
 0x368   :  { %v756_v42 = vpop.f32.mrf.mxu1 }
 0x369   :  { %v412_v43 = vadd.f32 %v411_v41, %v86_v39 }
 0x36b   :  { %808 = vtanh.f32 %v412_v43 }
 0x378   :  { %v809_v44 = vpop.eup %808 }
 0x379   :  { %768 = vmatmul.mubr.msk.f32.vlgmr.msra.gmra.mxu0 %vm109_vm1, %v809_v44 }
 0x37a   :  { %784 = vmatpush3.msra.mxu0 %v907_v1  ;;  %793 = vmatprep.mubr.msk.f32.mxu0 %vm861_vm0, %v860_v0 }
 0x37b   :  { %785 = vmatprep.subr.mxu0 %v860_v0 }
 0x37c   :  { %786 = vmatpush3.msra.mxu0 %v912_v2 }
 0x37d   :  { %787 = vmatprep.subr.mxu0 %v860_v0 }
 0x37e   :  { %788 = vmatpush3.msra.mxu0 %v918_v3 }
 0x37f   :  { %789 = vmatprep.subr.mxu0 %v860_v0 }
 0x380   :  { %790 = vmatpush3.msra.mxu0 %v937_v8 }
 0x381   :  { %791 = vmatprep.subr.mxu0 %v860_v0 }
 0x382   :  { %792 = vmatpush3.msra.mxu0 %v947_v10 }
 0x439   :  { %v483_v48 = vpop.f32.mrf.mxu0 }
 0x43a   :  { %v487_v49 = vmul.f32 %v483_v48, %v978_v14 }
 0x43b   :  { %v769_v50 = vpop.f32.mrf.mxu0 }
 0x43c   :  { %v488_v51 = vadd.f32 %v487_v49, %v93_v47 }
 0x43e   :  { %810 = vtanh.f32 %v488_v51 }
 0x44b   :  { %v811_v52 = vpop.eup %810 }
 0x44c   :  { %781 = vmatmul.mubr.msk.f32.vlgmr.msra.gmra.mxu1 %vm109_vm1, %v811_v52 }
 0x50c   :  { %v559_v56 = vpop.f32.mrf.mxu1 }
 0x50d   :  { %v563_v57 = vmul.f32 %v559_v56, %v978_v14 }
 0x50e   :  { %v782_v58 = vpop.f32.mrf.mxu1 }
 0x50f   :  { %v564_v59 = vadd.f32 %v563_v57, %v100_v55 }
 0x511   :  { %812 = vtanh.f32 %v564_v59 }
 0x51e   :  { %v813_v60 = vpop.eup %812 }
 0x51f   :  { %794 = vmatmul.mubr.msk.f32.vlgmr.msra.gmra.mxu0 %vm109_vm1, %v813_v60 }
 0x5df   :  { %v635_v0 = vpop.f32.mrf.mxu0 }
 0x5e0   :  { %v639_v1 = vmul.f32 %v635_v0, %v978_v14 }
 0x5e1   :  { %v795_v2 = vpop.f32.mrf.mxu0 }
 0x5e2   :  { %v640_v3 = vadd.f32 %v639_v1, %v107_v63 }
 0x5e4   :  { %641 = vst [vmem:[%s1078_s5] sm:$0xff] %v640_v3 }
 0x5e5   :  { %646 = vsyncpa [#allocation3], 1 }
 0x5e6   :  { %647 = vsyncpa [#allocation5], 1 }

</bundles_post_ra>
